<compile_context>
chip_gen: v6e
topology: v6e:2x2x1
jax: 0.10.0
libtpu: 0.0.40
codegen_flags: <defaults>
</compile_context>

<pallas_src>
import math

import jax
import jax.numpy as jnp
from jax.experimental import pallas as pl
from jax.experimental.pallas import tpu as pltpu

_LANE = 128
_SUBLANE = 8


def _round_up(x, m):
    return ((x + m - 1) // m) * m


def _pad2(a, rows, cols):
    r, c = a.shape
    return jnp.pad(a, ((0, rows - r), (0, cols - c)))


# ------------------------------ fused kernel ------------------------------- #

def _make_fused_mlp_kernel(n_layers, input_skips, h_pad, compute_dtype):
    """Builds kernel(x_ref, z_ref, w0, b0, ..., w_{L-1}, b_{L-1}, o_ref)."""
    skips = frozenset(input_skips)

    def kernel(x_ref, z_ref, *rest):
        o_ref = rest[-1]
        wb = rest[:-1]                      # alternating (w_ref, b_ref)
        y = x_ref[...]                      # (tile_n, din_pad)  compute_dtype
        z = z_ref[...]                      # (tile_n, ds_pad)   compute_dtype
        act = None
        for li in range(n_layers):          # unrolled at trace time
            w_ref = wb[2 * li]
            b_ref = wb[2 * li + 1]
            if li in skips:
                # concat([y, z], -1) @ W  ==  y @ W[:h_pad] + z @ W[h_pad:]
                acc = jnp.dot(y, w_ref[:h_pad, :],
                              preferred_element_type=jnp.float32)
                acc = acc + jnp.dot(z, w_ref[h_pad:, :],
                                    preferred_element_type=jnp.float32)
            else:
                acc = jnp.dot(y, w_ref[...],
                              preferred_element_type=jnp.float32)
            # Bias add + ReLU in f32 (v5e VPU has no native bf16).
            act = jnp.maximum(acc + b_ref[...], 0.0)
            y = act.astype(compute_dtype)   # operand for the next matmul
        o_ref[...] = act.astype(o_ref.dtype)

    return kernel


# --------------------------- parameter handling ---------------------------- #

def init_mlp_with_input_skips(key, n_layers, input_dim, output_dim, skip_dim,
                              hidden_dim, input_skips=()):
    """Xavier-uniform weights / PyTorch-default U(+-1/sqrt(fan_in)) biases.

    Weights stored as (dim_in, dim_out) (transpose of nn.Linear) so the kernel
    computes y @ W + b directly on the MXU.
    """
    assert n_layers >= 1
    if n_layers > 1:
        # Inherited from the PyTorch reference: non-first, non-skip layers map
        # hidden_dim -> output_dim, so the chain is only shape-consistent when
        # hidden_dim == output_dim.
        assert hidden_dim == output_dim, "layer chain requires hidden_dim == output_dim"
    params = []
    skips = set(input_skips)
    for layeri in range(n_layers):
        if layeri == 0:
            dimin, dimout = input_dim, hidden_dim
        elif layeri in skips:
            dimin, dimout = hidden_dim + skip_dim, hidden_dim
        else:
            dimin, dimout = hidden_dim, output_dim
        key, kw, kb = jax.random.split(key, 3)
        xavier_bound = math.sqrt(6.0 / (dimin + dimout))
        w = jax.random.uniform(kw, (dimin, dimout), jnp.float32,
                               -xavier_bound, xavier_bound)
        bias_bound = 1.0 / math.sqrt(dimin)
        b = jax.random.uniform(kb, (1, dimout), jnp.float32,
                               -bias_bound, bias_bound)
        params.append((w, b))
    return params


def prepare_padded_params(params, input_dim, skip_dim, hidden_dim, input_skips,
                          compute_dtype=jnp.float32):
    """One-time lane-alignment (pad to multiples of 128) + dtype cast.

    Done once at init time so the forward pass performs no per-call weight
    slicing/copies. Zero padding keeps the math exact: padded activation lanes
    stay zero through every layer (zero weight rows/cols, zero bias lanes).
    """
    skips = set(input_skips)
    din_p = _round_up(max(input_dim, 1), _LANE)
    ds_p = _round_up(max(skip_dim, 1), _LANE)
    h_p = _round_up(max(hidden_dim, 1), _LANE)

    padded = []
    for li, (w, b) in enumerate(params):
        if li == 0:
            w_p = _pad2(w, din_p, h_p)
        elif li in skips:
            # Split at hidden_dim so the y-part occupies rows [0:h_p) and the
            # z-part rows [h_p:h_p+ds_p) of one resident block.
            w_p = jnp.concatenate(
                [_pad2(w[:hidden_dim], h_p, h_p),
                 _pad2(w[hidden_dim:], ds_p, h_p)], axis=0)
        else:
            w_p = _pad2(w, h_p, h_p)
        b_p = _pad2(b, 1, h_p).astype(jnp.float32)        # bias stays f32
        padded.append((w_p.astype(compute_dtype), b_p))
    dims = dict(din_p=din_p, ds_p=ds_p, h_p=h_p)
    return padded, dims


# -------------------------------- forward ----------------------------------- #

def mlp_with_input_skips_forward(padded_params, dims, x, z, n_layers,
                                 input_skips, output_dim, *,
                                 tile_n=512, compute_dtype=jnp.float32):
    """y = x; per layer: y = relu(linear(concat([y, z]) if skip else y)).

    x: (..., input_dim), z: (..., skip_dim)  ->  (..., output_dim)
    """
    din_p, ds_p, h_p = dims["din_p"], dims["ds_p"], dims["h_p"]
    lead_shape = x.shape[:-1]
    xf = x.reshape((-1, x.shape[-1]))
    zf = z.reshape((-1, z.shape[-1]))
    n = xf.shape[0]

    # Row tile: multiple of 8 sublanes, never larger than the (rounded) row
    # count so tiny inputs don't get blown up to a full 512-row tile.
    tile = max(_SUBLANE,
               min(_round_up(tile_n, _SUBLANE), _round_up(n, _SUBLANE)))
    n_pad = _round_up(n, tile)
    grid = (n_pad // tile,)

    xp = jnp.pad(xf, ((0, n_pad - n), (0, din_p - xf.shape[1]))).astype(compute_dtype)
    zp = jnp.pad(zf, ((0, n_pad - n), (0, ds_p - zf.shape[1]))).astype(compute_dtype)

    kernel = _make_fused_mlp_kernel(n_layers, input_skips, h_p, compute_dtype)

    in_specs = [
        pl.BlockSpec((tile, din_p), lambda i: (i, 0)),
        pl.BlockSpec((tile, ds_p), lambda i: (i, 0)),
    ]
    flat_wb = []
    for (w_p, b_p) in padded_params:
        # Full-array blocks with constant index maps -> weights/biases stay
        # resident in VMEM across the whole row-tile grid.
        in_specs.append(pl.BlockSpec(w_p.shape, lambda i: (0, 0)))
        in_specs.append(pl.BlockSpec(b_p.shape, lambda i: (0, 0)))
        flat_wb.extend([w_p, b_p])

    out = pl.pallas_call(
        kernel,
        out_shape=jax.ShapeDtypeStruct((n_pad, h_p), jnp.float32),
        grid_spec=pltpu.PrefetchScalarGridSpec(
            num_scalar_prefetch=0,
            grid=grid,
            in_specs=in_specs,
            out_specs=pl.BlockSpec((tile, h_p), lambda i: (i, 0)),
        ),
        compiler_params=pltpu.CompilerParams(
            dimension_semantics=("parallel",)),
    )(xp, zp, *flat_wb)

    out = out[:n, :output_dim]
    return out.reshape(lead_shape + (output_dim,))


# ------------------------------- reference ---------------------------------- #

def _reference_forward(params, x, z, input_skips):
    skips = set(input_skips)
    y = x
    for li, (w, b) in enumerate(params):
        if li in skips:
            y = jnp.concatenate((y, z), axis=-1)
        y = jax.nn.relu(y @ w + b[0])
    return y


if __name__ == "__main__":
    # Small NeRF-like config (hidden_dim == output_dim, as the reference
    # module's layer dims require for chaining).
    n_layers = 4
    input_dim = 16
    skip_dim = 16
    hidden_dim = 32
    output_dim = 32
    input_skips = [2]

    key = jax.random.PRNGKey(0)
    kp, kx, kz, kx2, kz2 = jax.random.split(key, 5)

    params = init_mlp_with_input_skips(
        kp, n_layers, input_dim, output_dim, skip_dim, hidden_dim, input_skips)

    # --- small-shape check, f32 operands ---------------------------------- #
    batch, seq = 2, 8            # N = 16 rows after flattening leading dims
    x = jax.random.normal(kx, (batch, seq, input_dim), jnp.float32)
    z = jax.random.normal(kz, (batch, seq, skip_dim), jnp.float32)

    pparams_f32, dims = prepare_padded_params(
        params, input_dim, skip_dim, hidden_dim, input_skips, jnp.float32)
    out = mlp_with_input_skips_forward(
        pparams_f32, dims, x, z, n_layers, input_skips, output_dim,
        tile_n=512, compute_dtype=jnp.float32)
    out = jax.block_until_ready(out)

    ref = _reference_forward(params, x, z, input_skips)
    assert out.shape == (batch, seq, output_dim), out.shape
    assert bool(jnp.allclose(out, ref, atol=1e-5, rtol=1e-5)), "f32 mismatch"

    # --- ragged N, multi-tile grid (exercises row padding + grid > 1) ------ #
    batch2, seq2 = 3, 50         # N = 150: not a multiple of 8 or of the tile
    x2 = jax.random.normal(kx2, (batch2, seq2, input_dim), jnp.float32)
    z2 = jax.random.normal(kz2, (batch2, seq2, skip_dim), jnp.float32)
    out2 = mlp_with_input_skips_forward(
        pparams_f32, dims, x2, z2, n_layers, input_skips, output_dim,
        tile_n=64, compute_dtype=jnp.float32)
    out2 = jax.block_until_ready(out2)
    ref2 = _reference_forward(params, x2, z2, input_skips)
    assert out2.shape == (batch2, seq2, output_dim), out2.shape
    assert bool(jnp.allclose(out2, ref2, atol=1e-5, rtol=1e-5)), "ragged mismatch"

    # --- bf16-operand path (v6e/v7x MXU peak; f32 accumulate/epilogue) ----- #
    pparams_bf16, dims_bf = prepare_padded_params(
        params, input_dim, skip_dim, hidden_dim, input_skips, jnp.bfloat16)
    out_bf = mlp_with_input_skips_forward(
        pparams_bf16, dims_bf, x, z, n_layers, input_skips, output_dim,
        tile_n=512, compute_dtype=jnp.bfloat16)
    out_bf = jax.block_until_ready(out_bf)
    assert bool(jnp.allclose(out_bf, ref, atol=1e-1, rtol=1e-1)), "bf16 mismatch"

    print("KERNEL_OK")
</pallas_src>

<mosaic_0001>
module attributes {stable_mosaic.version = 11 : i64} {
  func.func @kernel(%arg0: i32, %arg1: memref<16x128xf32, #tpu.memory_space<vmem>>, %arg2: memref<16x128xf32, #tpu.memory_space<vmem>>, %arg3: memref<128x128xf32, #tpu.memory_space<vmem>>, %arg4: memref<1x128xf32, #tpu.memory_space<vmem>>, %arg5: memref<128x128xf32, #tpu.memory_space<vmem>>, %arg6: memref<1x128xf32, #tpu.memory_space<vmem>>, %arg7: memref<256x128xf32, #tpu.memory_space<vmem>>, %arg8: memref<1x128xf32, #tpu.memory_space<vmem>>, %arg9: memref<128x128xf32, #tpu.memory_space<vmem>>, %arg10: memref<1x128xf32, #tpu.memory_space<vmem>>, %arg11: memref<16x128xf32, #tpu.memory_space<vmem>>) attributes {dimension_semantics = [#tpu.dimension_semantics<parallel>], iteration_bounds = array<i64: 1>, scalar_prefetch = 0 : i64, scratch_operands = 0 : i64, tpu.core_type = #tpu.core_type<tc>, window_params = [{transform_indices = @transform_0, window_bounds = array<i64: 16, 128>}, {transform_indices = @transform_1, window_bounds = array<i64: 16, 128>}, {pipeline_mode = #tpu.pipeline_mode<synchronous>, transform_indices = @transform_2, window_bounds = array<i64: 128, 128>}, {pipeline_mode = #tpu.pipeline_mode<synchronous>, transform_indices = @transform_3, window_bounds = array<i64: 1, 128>}, {pipeline_mode = #tpu.pipeline_mode<synchronous>, transform_indices = @transform_4, window_bounds = array<i64: 128, 128>}, {pipeline_mode = #tpu.pipeline_mode<synchronous>, transform_indices = @transform_5, window_bounds = array<i64: 1, 128>}, {pipeline_mode = #tpu.pipeline_mode<synchronous>, transform_indices = @transform_6, window_bounds = array<i64: 256, 128>}, {pipeline_mode = #tpu.pipeline_mode<synchronous>, transform_indices = @transform_7, window_bounds = array<i64: 1, 128>}, {pipeline_mode = #tpu.pipeline_mode<synchronous>, transform_indices = @transform_8, window_bounds = array<i64: 128, 128>}, {pipeline_mode = #tpu.pipeline_mode<synchronous>, transform_indices = @transform_9, window_bounds = array<i64: 1, 128>}, {transform_indices = @transform_10, window_bounds = array<i64: 16, 128>}]} {
    %c0 = arith.constant 0 : index
    %c0_0 = arith.constant 0 : index
    %0 = vector.load %arg1[%c0, %c0_0] : memref<16x128xf32, #tpu.memory_space<vmem>>, vector<16x128xf32>
    %c0_1 = arith.constant 0 : index
    %c0_2 = arith.constant 0 : index
    %1 = vector.load %arg2[%c0_1, %c0_2] : memref<16x128xf32, #tpu.memory_space<vmem>>, vector<16x128xf32>
    %c0_3 = arith.constant 0 : index
    %c0_4 = arith.constant 0 : index
    %2 = vector.load %arg3[%c0_3, %c0_4] : memref<128x128xf32, #tpu.memory_space<vmem>>, vector<128x128xf32>
    %cst = arith.constant dense<0.000000e+00> : vector<16x128xf32>
    %3 = tpu.matmul %0, %2, %cst {dimension_numbers = #tpu.dot_dimension_numbers<[1], [0], [0], [1], [0, 0, 1, 1], [], []>} : vector<16x128xf32>, vector<128x128xf32>, vector<16x128xf32> -> vector<16x128xf32>
    %c0_5 = arith.constant 0 : index
    %c0_6 = arith.constant 0 : index
    %4 = vector.load %arg4[%c0_5, %c0_6] : memref<1x128xf32, #tpu.memory_space<vmem>>, vector<1x128xf32>
    %5 = vector.broadcast %4 : vector<1x128xf32> to vector<16x128xf32>
    %6 = arith.addf %3, %5 : vector<16x128xf32>
    %cst_7 = arith.constant 0.000000e+00 : f32
    %7 = vector.broadcast %cst_7 : f32 to vector<16x128xf32>
    %8 = arith.maximumf %6, %7 : vector<16x128xf32>
    %c0_8 = arith.constant 0 : index
    %c0_9 = arith.constant 0 : index
    %9 = vector.load %arg5[%c0_8, %c0_9] : memref<128x128xf32, #tpu.memory_space<vmem>>, vector<128x128xf32>
    %cst_10 = arith.constant dense<0.000000e+00> : vector<16x128xf32>
    %10 = tpu.matmul %8, %9, %cst_10 {dimension_numbers = #tpu.dot_dimension_numbers<[1], [0], [0], [1], [0, 0, 1, 1], [], []>} : vector<16x128xf32>, vector<128x128xf32>, vector<16x128xf32> -> vector<16x128xf32>
    %c0_11 = arith.constant 0 : index
    %c0_12 = arith.constant 0 : index
    %11 = vector.load %arg6[%c0_11, %c0_12] : memref<1x128xf32, #tpu.memory_space<vmem>>, vector<1x128xf32>
    %12 = vector.broadcast %11 : vector<1x128xf32> to vector<16x128xf32>
    %13 = arith.addf %10, %12 : vector<16x128xf32>
    %cst_13 = arith.constant 0.000000e+00 : f32
    %14 = vector.broadcast %cst_13 : f32 to vector<16x128xf32>
    %15 = arith.maximumf %13, %14 : vector<16x128xf32>
    %c0_14 = arith.constant 0 : index
    %c0_15 = arith.constant 0 : index
    %16 = vector.load %arg7[%c0_14, %c0_15] : memref<256x128xf32, #tpu.memory_space<vmem>>, vector<128x128xf32>
    %cst_16 = arith.constant dense<0.000000e+00> : vector<16x128xf32>
    %17 = tpu.matmul %15, %16, %cst_16 {dimension_numbers = #tpu.dot_dimension_numbers<[1], [0], [0], [1], [0, 0, 1, 1], [], []>} : vector<16x128xf32>, vector<128x128xf32>, vector<16x128xf32> -> vector<16x128xf32>
    %c128 = arith.constant 128 : index
    %c0_17 = arith.constant 0 : index
    %18 = vector.load %arg7[%c128, %c0_17] : memref<256x128xf32, #tpu.memory_space<vmem>>, vector<128x128xf32>
    %cst_18 = arith.constant dense<0.000000e+00> : vector<16x128xf32>
    %19 = tpu.matmul %1, %18, %cst_18 {dimension_numbers = #tpu.dot_dimension_numbers<[1], [0], [0], [1], [0, 0, 1, 1], [], []>} : vector<16x128xf32>, vector<128x128xf32>, vector<16x128xf32> -> vector<16x128xf32>
    %20 = arith.addf %17, %19 : vector<16x128xf32>
    %c0_19 = arith.constant 0 : index
    %c0_20 = arith.constant 0 : index
    %21 = vector.load %arg8[%c0_19, %c0_20] : memref<1x128xf32, #tpu.memory_space<vmem>>, vector<1x128xf32>
    %22 = vector.broadcast %21 : vector<1x128xf32> to vector<16x128xf32>
    %23 = arith.addf %20, %22 : vector<16x128xf32>
    %cst_21 = arith.constant 0.000000e+00 : f32
    %24 = vector.broadcast %cst_21 : f32 to vector<16x128xf32>
    %25 = arith.maximumf %23, %24 : vector<16x128xf32>
    %c0_22 = arith.constant 0 : index
    %c0_23 = arith.constant 0 : index
    %26 = vector.load %arg9[%c0_22, %c0_23] : memref<128x128xf32, #tpu.memory_space<vmem>>, vector<128x128xf32>
    %cst_24 = arith.constant dense<0.000000e+00> : vector<16x128xf32>
    %27 = tpu.matmul %25, %26, %cst_24 {dimension_numbers = #tpu.dot_dimension_numbers<[1], [0], [0], [1], [0, 0, 1, 1], [], []>} : vector<16x128xf32>, vector<128x128xf32>, vector<16x128xf32> -> vector<16x128xf32>
    %c0_25 = arith.constant 0 : index
    %c0_26 = arith.constant 0 : index
    %28 = vector.load %arg10[%c0_25, %c0_26] : memref<1x128xf32, #tpu.memory_space<vmem>>, vector<1x128xf32>
    %29 = vector.broadcast %28 : vector<1x128xf32> to vector<16x128xf32>
    %30 = arith.addf %27, %29 : vector<16x128xf32>
    %cst_27 = arith.constant 0.000000e+00 : f32
    %31 = vector.broadcast %cst_27 : f32 to vector<16x128xf32>
    %32 = arith.maximumf %30, %31 : vector<16x128xf32>
    %c0_28 = arith.constant 0 : index
    %c0_29 = arith.constant 0 : index
    %33 = vector.load %arg11[%c0_28, %c0_29] : memref<16x128xf32, #tpu.memory_space<vmem>>, vector<16x128xf32>
    tpu.vector_store %arg11[%c0_28, %c0_29], %32 {strides = array<i32>} : memref<16x128xf32, #tpu.memory_space<vmem>>, vector<16x128xf32>,
    return
  }
  func.func @transform_0(%arg0: i32) -> (i32, i32) {
    %c0_i32 = arith.constant 0 : i32
    %c0_i32_0 = arith.constant 0 : i32
    return %arg0, %c0_i32 : i32, i32
  }
  func.func @transform_1(%arg0: i32) -> (i32, i32) {
    %c0_i32 = arith.constant 0 : i32
    %c0_i32_0 = arith.constant 0 : i32
    return %arg0, %c0_i32 : i32, i32
  }
  func.func @transform_2(%arg0: i32) -> (i32, i32) {
    %c0_i32 = arith.constant 0 : i32
    %c0_i32_0 = arith.constant 0 : i32
    %c0_i32_1 = arith.constant 0 : i32
    return %c0_i32, %c0_i32_0 : i32, i32
  }
  func.func @transform_3(%arg0: i32) -> (i32, i32) {
    %c0_i32 = arith.constant 0 : i32
    %c0_i32_0 = arith.constant 0 : i32
    %c0_i32_1 = arith.constant 0 : i32
    return %c0_i32, %c0_i32_0 : i32, i32
  }
  func.func @transform_4(%arg0: i32) -> (i32, i32) {
    %c0_i32 = arith.constant 0 : i32
    %c0_i32_0 = arith.constant 0 : i32
    %c0_i32_1 = arith.constant 0 : i32
    return %c0_i32, %c0_i32_0 : i32, i32
  }
  func.func @transform_5(%arg0: i32) -> (i32, i32) {
    %c0_i32 = arith.constant 0 : i32
    %c0_i32_0 = arith.constant 0 : i32
    %c0_i32_1 = arith.constant 0 : i32
    return %c0_i32, %c0_i32_0 : i32, i32
  }
  func.func @transform_6(%arg0: i32) -> (i32, i32) {
    %c0_i32 = arith.constant 0 : i32
    %c0_i32_0 = arith.constant 0 : i32
    %c0_i32_1 = arith.constant 0 : i32
    return %c0_i32, %c0_i32_0 : i32, i32
  }
  func.func @transform_7(%arg0: i32) -> (i32, i32) {
    %c0_i32 = arith.constant 0 : i32
    %c0_i32_0 = arith.constant 0 : i32
    %c0_i32_1 = arith.constant 0 : i32
    return %c0_i32, %c0_i32_0 : i32, i32
  }
  func.func @transform_8(%arg0: i32) -> (i32, i32) {
    %c0_i32 = arith.constant 0 : i32
    %c0_i32_0 = arith.constant 0 : i32
    %c0_i32_1 = arith.constant 0 : i32
    return %c0_i32, %c0_i32_0 : i32, i32
  }
  func.func @transform_9(%arg0: i32) -> (i32, i32) {
    %c0_i32 = arith.constant 0 : i32
    %c0_i32_0 = arith.constant 0 : i32
    %c0_i32_1 = arith.constant 0 : i32
    return %c0_i32, %c0_i32_0 : i32, i32
  }
  func.func @transform_10(%arg0: i32) -> (i32, i32) {
    %c0_i32 = arith.constant 0 : i32
    %c0_i32_0 = arith.constant 0 : i32
    return %arg0, %c0_i32 : i32, i32
  }
}

</mosaic_0001>

<bundles_post_ra>
// kernel: tpu_custom_call.1
= control target key start
LH: loop header
LB: loop body
LE: loop exit
PB: predicated region body
PF: predicated region fallthrough
CT: control target
= control target key end

     0   :  { %15 = vsyncpa [#allocation3], 0  ;;  %s1183_s0 = inlined_call_operand.hbm [shape: f32[16,128], index: 0, kind: input, shape index: {}]   ;;  %s1184_s1 = inlined_call_operand.hbm [shape: f32[16,128], index: 1, kind: input, shape index: {}]   ;;  %s1185_s2 = inlined_call_operand.hbm [shape: f32[128,128], index: 2, kind: input, shape index: {}]   ;;  %s1186_s3 = inlined_call_operand.vmem [shape: f32[1,128], index: 3, kind: input, shape index: {}]   ;;  %s1187_s4 = inlined_call_operand.hbm [shape: f32[128,128], index: 4, kind: input, shape index: {}]   ;;  %s1188_s5 = inlined_call_operand.vmem [shape: f32[1,128], index: 5, kind: input, shape index: {}]   ;;  %s1189_s6 = inlined_call_operand.hbm [shape: f32[256,128], index: 6, kind: input, shape index: {}]   ;;  %s1190_s7 = inlined_call_operand.vmem [shape: f32[1,128], index: 7, kind: input, shape index: {}]   ;;  %s1191_s8 = inlined_call_operand.hbm [shape: f32[128,128], index: 8, kind: input, shape index: {}]   ;;  %s1192_s9 = inlined_call_operand.vmem [shape: f32[1,128], index: 9, kind: input, shape index: {}]   ;;  %s1193_s10 = inlined_call_operand.hbm [shape: f32[16,128], index: 10, kind: output, shape index: {}]  }
   0x1   :  { %16 = vsyncpa [#allocation6], 0 }
   0x2   :  { %17 = vsyncpa [#allocation9], 0 }
   0x3   :  { %18 = vsyncpa [#allocation12], 0 }
   0x4   :  { %19 = vsyncpa [#allocation4], 0  ;;  %s1065_s13 = smov [#allocation5]   ;;  %s1066_s15 = smov [#allocation8]  }
   0x5   :  { %s37_s14 = sshll.u32 %s1065_s13, 4  ;;  %s63_s16 = sshll.u32 %s1066_s15, 4  ;;  %s38_s14 = int_to_ptr.vmem [resolvable:$true] %s37_s14  ;;  %s64_s16 = int_to_ptr.vmem [resolvable:$true] %s63_s16 }
   0x6   :  { %s923_s17 = scalar_lea.vmem %s38_s14, 256  ;;  %p928_p1 = scmp.lt.s32.totalorder %s38_s14, %s38_s14 }
   0x7   :  { %p924_p0 = scmp.ne.s32.totalorder %s38_s14, %s923_s17  ;;  %p929_p2 = scmp.lt.s32.totalorder %s923_s17, %s923_s17 }
   0x9   :  { %p930_p3 = por %p929_p2, %p928_p1 }
   0xb   :  { %p931_p4 = pnand %p930_p3, %p924_p0 }
   0xd   :  { %934 = shalt.err (!%p931_p4)
}
   0xe   :  { %s1067_s18 = smov 128   ;;  %s1068_s19 = smov 8  }
   0xf   :  { %43 = dma.hbm_to_vmem [thread:$0]  %s1184_s1, 256, %s38_s14, [#allocation6], %s1067_s18, %s1067_s18, %s1068_s19  }
  0x10   :  { %s943_s22 = scalar_lea.vmem %s64_s16, 2048  ;;  %p948_p6 = scmp.lt.s32.totalorder %s64_s16, %s64_s16 }
  0x11   :  { %p944_p5 = scmp.ne.s32.totalorder %s64_s16, %s943_s22  ;;  %p949_p7 = scmp.lt.s32.totalorder %s943_s22, %s943_s22 }
  0x13   :  { %p950_p8 = por %p949_p7, %p948_p6 }
  0x15   :  { %p951_p9 = pnand %p950_p8, %p944_p5 }
  0x17   :  { %954 = shalt.err (!%p951_p9)
}
  0x18   :  { %69 = dma.hbm_to_vmem [thread:$0]  %s1187_s4, 2048, %s64_s16, [#allocation9], %s1067_s18, %s1067_s18, %s1068_s19  }
  0x19   :  { %s1069_s25 = smov [#allocation2]   ;;  %s1070_s27 = smov [#allocation7]  }
  0x1a   :  { %s25_s26 = sshll.u32 %s1069_s25, 4  ;;  %s49_s28 = sshll.u32 %s1070_s27, 4  ;;  %s26_s26 = int_to_ptr.vmem [resolvable:$true] %s25_s26  ;;  %s50_s28 = int_to_ptr.vmem [resolvable:$true] %s49_s28 }
  0x1b   :  { %s963_s1 = scalar_lea.vmem %s26_s26, 256  ;;  %p968_p11 = scmp.lt.s32.totalorder %s26_s26, %s26_s26 }
  0x1c   :  { %p964_p10 = scmp.ne.s32.totalorder %s26_s26, %s963_s1  ;;  %p969_p12 = scmp.lt.s32.totalorder %s963_s1, %s963_s1 }
  0x1e   :  { %p970_p13 = por %p969_p12, %p968_p11 }
  0x20   :  { %p971_p0 = pnand %p970_p13, %p964_p10 }
  0x22   :  { %974 = shalt.err (!%p971_p0)
}
  0x23   :  { %31 = dma.hbm_to_vmem [thread:$0]  %s1183_s0, 256, %s26_s26, [#allocation3], %s1067_s18, %s1067_s18, %s1068_s19  }
  0x24   :  { %s983_s4 = scalar_lea.vmem %s50_s28, 2048  ;;  %p988_p2 = scmp.lt.s32.totalorder %s50_s28, %s50_s28 }
  0x25   :  { %p984_p1 = scmp.ne.s32.totalorder %s50_s28, %s983_s4  ;;  %p989_p3 = scmp.lt.s32.totalorder %s983_s4, %s983_s4 }
  0x27   :  { %p990_p4 = por %p989_p3, %p988_p2 }
  0x29   :  { %p991_p5 = pnand %p990_p4, %p984_p1 }
  0x2b   :  { %994 = shalt.err (!%p991_p5)
}
  0x2c   :  { %55 = dma.hbm_to_vmem [thread:$0]  %s1185_s2, 2048, %s50_s28, [#allocation6], %s1067_s18, %s1067_s18, %s1068_s19  }
  0x2d   :  { %s1071_s13 = smov [#allocation10]   ;;  %s1072_s15 = smov [#allocation11]  }
  0x2e   :  { %s77_s14 = sshll.u32 %s1071_s13, 4  ;;  %s91_s16 = sshll.u32 %s1072_s15, 4  ;;  %s78_s14 = int_to_ptr.vmem [resolvable:$true] %s77_s14  ;;  %s92_s16 = int_to_ptr.vmem [resolvable:$true] %s91_s16 }
  0x2f   :  { %s1003_s0 = scalar_lea.vmem %s78_s14, 4096  ;;  %p1008_p7 = scmp.lt.s32.totalorder %s78_s14, %s78_s14 }
  0x30   :  { %p1004_p6 = scmp.ne.s32.totalorder %s78_s14, %s1003_s0  ;;  %p1009_p8 = scmp.lt.s32.totalorder %s1003_s0, %s1003_s0 }
  0x32   :  { %p1010_p9 = por %p1009_p8, %p1008_p7 }
  0x34   :  { %p1011_p10 = pnand %p1010_p9, %p1004_p6 }
  0x36   :  { %1014 = shalt.err (!%p1011_p10)
}
  0x37   :  { %83 = dma.hbm_to_vmem [thread:$0]  %s1189_s6, 4096, %s78_s14, [#allocation9], %s1067_s18, %s1067_s18, %s1068_s19  }
  0x38   :  { %s1023_s2 = scalar_lea.vmem %s92_s16, 2048  ;;  %p1028_p12 = scmp.lt.s32.totalorder %s92_s16, %s92_s16 }
  0x39   :  { %p1024_p11 = scmp.ne.s32.totalorder %s92_s16, %s1023_s2  ;;  %p1029_p13 = scmp.lt.s32.totalorder %s1023_s2, %s1023_s2 }
  0x3b   :  { %p1030_p0 = por %p1029_p13, %p1028_p12 }
  0x3d   :  { %p1031_p1 = pnand %p1030_p0, %p1024_p11 }
  0x3f   :  { %1034 = shalt.err (!%p1031_p1)
}
  0x40   :  { %97 = dma.hbm_to_vmem [thread:$0]  %s1191_s8, 2048, %s92_s16, [#allocation12], %s1067_s18, %s1067_s18, %s1068_s19  }
  0x41   :  { %1055 = dma.done.wait [#allocation3], 256  }
  0x42   :  { %1056 = vsyncadd [#allocation3], 4294967040 }
  0x43   :  { %1057 = dma.done.wait [#allocation6], 2304  }
  0x44   :  { %1058 = vsyncadd [#allocation6], 4294964992 }
  0x45   :  { %1059 = dma.done.wait [#allocation9], 6144  }
  0x46   :  { %1060 = vsyncadd [#allocation9], 4294961152 }
  0x47   :  { %1061 = dma.done.wait [#allocation12], 2048  }
  0x48   :  { %1062 = vsyncadd [#allocation12], 4294965248  ;;  %v137_v0 = vld [vmem:[#allocation7 + $0x78] sm:$0xff]  ;;  %v136_v1 = vld [vmem:[#allocation7 + $0x70] sm:$0xff]  ;;  %s1073_s27 = smov [#allocation13]  }
  0x49   :  { %731 = vmatprep.subr.mxu0 %v137_v0  ;;  %v135_v2 = vld [vmem:[#allocation7 + $0x68] sm:$0xff]  ;;  %v134_v3 = vld [vmem:[#allocation7 + $0x60] sm:$0xff]  ;;  %v133_v5 = vld [vmem:[#allocation7 + $0x58] sm:$0xff]  ;;  %s622_s28 = sshll.u32 %s1073_s27, 4  ;;  %s623_s28 = int_to_ptr.vmem [resolvable:$true] %s622_s28 }
  0x4a   :  { %732 = vmatpush3.msra.mxu0 %v137_v0  ;;  %v118_v4 = vld [vmem:[#allocation2] sm:$0xff]  ;;  %v237_v6 = vld [vmem:[#allocation8 + $0x78] sm:$0xff]  ;;  %v236_v7 = vld [vmem:[#allocation8 + $0x70] sm:$0xff]  ;;  %p1040_p3 = scmp.lt.s32.totalorder %s623_s28, %s623_s28 }
  0x4b   :  { %733 = vmatprep.subr.mxu0 %v136_v1  ;;  %763 = vmatprep.mubr.f32.mxu0 %v118_v4  ;;  %v132_v8 = vld [vmem:[#allocation7 + $0x50] sm:$0xff]  ;;  %v235_v9 = vld [vmem:[#allocation8 + $0x68] sm:$0xff]  ;;  %v234_v11 = vld [vmem:[#allocation8 + $0x60] sm:$0xff] }
  0x4c   :  { %734 = vmatpush3.msra.mxu0 %v136_v1  ;;  %766 = vmatprep.subr.mxu1 %v237_v6  ;;  %v131_v10 = vld [vmem:[#allocation7 + $0x48] sm:$0xff]  ;;  %v130_v12 = vld [vmem:[#allocation7 + $0x40] sm:$0xff]  ;;  %v233_v13 = vld [vmem:[#allocation8 + $0x58] sm:$0xff] }
  0x4d   :  { %735 = vmatprep.subr.mxu0 %v135_v2  ;;  %767 = vmatpush3.msra.mxu1 %v237_v6  ;;  %v129_v14 = vld [vmem:[#allocation7 + $0x38] sm:$0xff]  ;;  %v232_v15 = vld [vmem:[#allocation8 + $0x50] sm:$0xff]  ;;  %v231_v17 = vld [vmem:[#allocation8 + $0x48] sm:$0xff] }
  0x4e   :  { %736 = vmatpush3.msra.mxu0 %v135_v2  ;;  %768 = vmatprep.subr.mxu1 %v236_v7  ;;  %v128_v16 = vld [vmem:[#allocation7 + $0x30] sm:$0xff]  ;;  %v127_v18 = vld [vmem:[#allocation7 + $0x28] sm:$0xff]  ;;  %v230_v19 = vld [vmem:[#allocation8 + $0x40] sm:$0xff] }
  0x4f   :  { %737 = vmatprep.subr.mxu0 %v134_v3  ;;  %769 = vmatpush3.msra.mxu1 %v236_v7  ;;  %v126_v20 = vld [vmem:[#allocation7 + $0x20] sm:$0xff]  ;;  %v229_v21 = vld [vmem:[#allocation8 + $0x38] sm:$0xff]  ;;  %v228_v23 = vld [vmem:[#allocation8 + $0x30] sm:$0xff] }
  0x50   :  { %738 = vmatpush3.msra.mxu0 %v134_v3  ;;  %770 = vmatprep.subr.mxu1 %v235_v9  ;;  %v125_v22 = vld [vmem:[#allocation7 + $0x18] sm:$0xff]  ;;  %v124_v24 = vld [vmem:[#allocation7 + $0x10] sm:$0xff]  ;;  %v227_v25 = vld [vmem:[#allocation8 + $0x28] sm:$0xff] }
  0x51   :  { %739 = vmatprep.subr.mxu0 %v133_v5  ;;  %771 = vmatpush3.msra.mxu1 %v235_v9  ;;  %v123_v26 = vld [vmem:[#allocation7 + $0x8] sm:$0xff]  ;;  %v226_v27 = vld [vmem:[#allocation8 + $0x20] sm:$0xff]  ;;  %v225_v30 = vld [vmem:[#allocation8 + $0x18] sm:$0xff] }
  0x52   :  { %740 = vmatpush3.msra.mxu0 %v133_v5  ;;  %772 = vmatprep.subr.mxu1 %v234_v11  ;;  %v122_v28 = vld [vmem:[#allocation7] sm:$0xff]  ;;  %v119_v29 = vld [vmem:[#allocation2 + $0x8] sm:$0xff]  ;;  %v224_v31 = vld [vmem:[#allocation8 + $0x10] sm:$0xff] }
  0x53   :  { %741 = vmatprep.subr.mxu0 %v132_v8  ;;  %773 = vmatpush3.msra.mxu1 %v234_v11  ;;  %v223_v32 = vld [vmem:[#allocation8 + $0x8] sm:$0xff]  ;;  %v222_v33 = vld [vmem:[#allocation8] sm:$0xff]  ;;  %v353_v34 = vld [vmem:[#allocation10 + $0xf8] sm:$0xff] }
  0x54   :  { %742 = vmatpush3.msra.mxu0 %v132_v8  ;;  %774 = vmatprep.subr.mxu1 %v233_v13  ;;  %v352_v35 = vld [vmem:[#allocation10 + $0xf0] sm:$0xff]  ;;  %v337_v36 = vld [vmem:[#allocation10 + $0x78] sm:$0xff]  ;;  %v351_v37 = vld [vmem:[#allocation10 + $0xe8] sm:$0xff] }
  0x55   :  { %743 = vmatprep.subr.mxu0 %v131_v10  ;;  %775 = vmatpush3.msra.mxu1 %v233_v13  ;;  %v350_v38 = vld [vmem:[#allocation10 + $0xe0] sm:$0xff]  ;;  %v349_v39 = vld [vmem:[#allocation10 + $0xd8] sm:$0xff]  ;;  %v348_v40 = vld [vmem:[#allocation10 + $0xd0] sm:$0xff] }
  0x56   :  { %744 = vmatpush3.msra.mxu0 %v131_v10  ;;  %776 = vmatprep.subr.mxu1 %v232_v15  ;;  %v347_v41 = vld [vmem:[#allocation10 + $0xc8] sm:$0xff]  ;;  %v346_v42 = vld [vmem:[#allocation10 + $0xc0] sm:$0xff]  ;;  %v345_v43 = vld [vmem:[#allocation10 + $0xb8] sm:$0xff] }
  0x57   :  { %745 = vmatprep.subr.mxu0 %v130_v12  ;;  %777 = vmatpush3.msra.mxu1 %v232_v15  ;;  %v344_v44 = vld [vmem:[#allocation10 + $0xb0] sm:$0xff]  ;;  %v343_v45 = vld [vmem:[#allocation10 + $0xa8] sm:$0xff]  ;;  %v342_v46 = vld [vmem:[#allocation10 + $0xa0] sm:$0xff] }
  0x58   :  { %746 = vmatpush3.msra.mxu0 %v130_v12  ;;  %778 = vmatprep.subr.mxu1 %v231_v17  ;;  %v341_v47 = vld [vmem:[#allocation10 + $0x98] sm:$0xff]  ;;  %v637_v48 = vld [vmem:[%s1186_s3] ss:$0 sm:$0xff]  ;;  %v336_v55 = vld [vmem:[#allocation10 + $0x70] sm:$0xff] }
  0x59   :  { %747 = vmatprep.subr.mxu0 %v129_v14  ;;  %779 = vmatpush3.msra.mxu1 %v231_v17  ;;  %v335_v56 = vld [vmem:[#allocation10 + $0x68] sm:$0xff]  ;;  %v334_v57 = vld [vmem:[#allocation10 + $0x60] sm:$0xff]  ;;  %v333_v58 = vld [vmem:[#allocation10 + $0x58] sm:$0xff] }
  0x5a   :  { %748 = vmatpush3.msra.mxu0 %v129_v14  ;;  %780 = vmatprep.subr.mxu1 %v230_v19  ;;  %v332_v59 = vld [vmem:[#allocation10 + $0x50] sm:$0xff]  ;;  %v331_v60 = vld [vmem:[#allocation10 + $0x48] sm:$0xff]  ;;  %v330_v61 = vld [vmem:[#allocation10 + $0x40] sm:$0xff] }
  0x5b   :  { %749 = vmatprep.subr.mxu0 %v128_v16  ;;  %781 = vmatpush3.msra.mxu1 %v230_v19  ;;  %v329_v62 = vld [vmem:[#allocation10 + $0x38] sm:$0xff]  ;;  %v328_v63 = vld [vmem:[#allocation10 + $0x30] sm:$0xff]  ;;  %v327_v0 = vld [vmem:[#allocation10 + $0x28] sm:$0xff] }
  0x5c   :  { %750 = vmatpush3.msra.mxu0 %v128_v16  ;;  %782 = vmatprep.subr.mxu1 %v229_v21  ;;  %v326_v1 = vld [vmem:[#allocation10 + $0x20] sm:$0xff]  ;;  %v340_v2 = vld [vmem:[#allocation10 + $0x90] sm:$0xff]  ;;  %v325_v3 = vld [vmem:[#allocation10 + $0x18] sm:$0xff] }
  0x5d   :  { %751 = vmatprep.subr.mxu0 %v127_v18  ;;  %783 = vmatpush3.msra.mxu1 %v229_v21  ;;  %v339_v4 = vld [vmem:[#allocation10 + $0x88] sm:$0xff]  ;;  %v324_v5 = vld [vmem:[#allocation10 + $0x10] sm:$0xff]  ;;  %v338_v6 = vld [vmem:[#allocation10 + $0x80] sm:$0xff] }
  0x5e   :  { %752 = vmatpush3.msra.mxu0 %v127_v18  ;;  %784 = vmatprep.subr.mxu1 %v228_v23  ;;  %v323_v7 = vld [vmem:[#allocation10 + $0x8] sm:$0xff]  ;;  %v120_v8 = vld [vmem:[#allocation5] sm:$0xff]  ;;  %v121_v9 = vld [vmem:[#allocation5 + $0x8] sm:$0xff] }
  0x5f   :  { %753 = vmatprep.subr.mxu0 %v126_v20  ;;  %785 = vmatpush3.msra.mxu1 %v228_v23  ;;  %v322_v10 = vld [vmem:[#allocation10] sm:$0xff]  ;;  %v530_v11 = vld [vmem:[#allocation11 + $0x78] sm:$0xff]  ;;  %v529_v12 = vld [vmem:[#allocation11 + $0x70] sm:$0xff] }
  0x60   :  { %754 = vmatpush3.msra.mxu0 %v126_v20  ;;  %786 = vmatprep.subr.mxu1 %v227_v25  ;;  %v528_v13 = vld [vmem:[#allocation11 + $0x68] sm:$0xff]  ;;  %v527_v14 = vld [vmem:[#allocation11 + $0x60] sm:$0xff]  ;;  %v526_v15 = vld [vmem:[#allocation11 + $0x58] sm:$0xff] }
  0x61   :  { %755 = vmatprep.subr.mxu0 %v125_v22  ;;  %787 = vmatpush3.msra.mxu1 %v227_v25  ;;  %v525_v16 = vld [vmem:[#allocation11 + $0x50] sm:$0xff]  ;;  %v524_v17 = vld [vmem:[#allocation11 + $0x48] sm:$0xff]  ;;  %v523_v18 = vld [vmem:[#allocation11 + $0x40] sm:$0xff] }
  0x62   :  { %756 = vmatpush3.msra.mxu0 %v125_v22  ;;  %788 = vmatprep.subr.mxu1 %v226_v27  ;;  %v522_v19 = vld [vmem:[#allocation11 + $0x38] sm:$0xff]  ;;  %v521_v20 = vld [vmem:[#allocation11 + $0x30] sm:$0xff]  ;;  %v520_v21 = vld [vmem:[#allocation11 + $0x28] sm:$0xff] }
  0x63   :  { %757 = vmatprep.subr.mxu0 %v124_v24  ;;  %789 = vmatpush3.msra.mxu1 %v226_v27  ;;  %v638_v22 = vld [vmem:[%s1188_s5] ss:$0 sm:$0xff] }
  0x64   :  { %758 = vmatpush3.msra.mxu0 %v124_v24  ;;  %790 = vmatprep.subr.mxu1 %v225_v30 }
  0x65   :  { %759 = vmatprep.subr.mxu0 %v123_v26  ;;  %791 = vmatpush3.msra.mxu1 %v225_v30  ;;  %v518_v30 = vld [vmem:[#allocation11 + $0x18] sm:$0xff] }
  0x66   :  { %760 = vmatpush3.msra.mxu0 %v123_v26  ;;  %792 = vmatprep.subr.mxu1 %v224_v31 }
  0x67   :  { %761 = vmatprep.subr.mxu0 %v122_v28  ;;  %793 = vmatpush3.msra.mxu1 %v224_v31  ;;  %v517_v31 = vld [vmem:[#allocation11 + $0x10] sm:$0xff] }
  0x68   :  { %762 = vmatpush3.msra.mxu0 %v122_v28  ;;  %794 = vmatprep.subr.mxu1 %v223_v32 }
  0x69   :  { %764 = vmatmul.mubr.f32.vlgmr.msra.gmra.mxu0 %v119_v29  ;;  %795 = vmatpush3.msra.mxu1 %v223_v32  ;;  %v519_v29 = vld [vmem:[#allocation11 + $0x20] sm:$0xff]  ;;  %v516_v32 = vld [vmem:[#allocation11 + $0x8] sm:$0xff] }
  0x6a   :  { %796 = vmatprep.subr.mxu1 %v222_v33  ;;  %801 = vmatprep.subr.mxu0 %v353_v34 }
  0x6b   :  { %797 = vmatpush3.msra.mxu1 %v222_v33  ;;  %802 = vmatpush3.msra.mxu0 %v353_v34  ;;  %v515_v33 = vld [vmem:[#allocation11] sm:$0xff] }
  0x6c   :  { %836 = vmatprep.subr.mxu1 %v337_v36  ;;  %803 = vmatprep.subr.mxu0 %v352_v35 }
  0x6d   :  { %804 = vmatpush3.msra.mxu0 %v352_v35  ;;  %833 = vmatprep.mubr.f32.mxu0 %v120_v8 }
  0x6e   :  { %805 = vmatprep.subr.mxu0 %v351_v37 }
  0x6f   :  { %806 = vmatpush3.msra.mxu0 %v351_v37  ;;  %v639_v37 = vld [vmem:[%s1190_s7] ss:$0 sm:$0xff]  ;;  %s1035_s7 = scalar_lea.vmem %s623_s28, 256 }
  0x70   :  { %807 = vmatprep.subr.mxu0 %v350_v38  ;;  %p1036_p2 = scmp.ne.s32.totalorder %s623_s28, %s1035_s7  ;;  %p1041_p4 = scmp.lt.s32.totalorder %s1035_s7, %s1035_s7 }
  0x71   :  { %808 = vmatpush3.msra.mxu0 %v350_v38 }
  0x72   :  { %809 = vmatprep.subr.mxu0 %v349_v39  ;;  %p1042_p5 = por %p1041_p4, %p1040_p3 }
  0x73   :  { %810 = vmatpush3.msra.mxu0 %v349_v39 }
  0x74   :  { %811 = vmatprep.subr.mxu0 %v348_v40  ;;  %p1043_p6 = pnand %p1042_p5, %p1036_p2 }
  0x75   :  { %812 = vmatpush3.msra.mxu0 %v348_v40 }
  0x76   :  { %813 = vmatprep.subr.mxu0 %v347_v41 }
  0x77   :  { %814 = vmatpush3.msra.mxu0 %v347_v41 }
  0x78   :  { %815 = vmatprep.subr.mxu0 %v346_v42 }
  0x79   :  { %816 = vmatpush3.msra.mxu0 %v346_v42 }
  0x7a   :  { %817 = vmatprep.subr.mxu0 %v345_v43 }
  0x7b   :  { %818 = vmatpush3.msra.mxu0 %v345_v43 }
  0x7c   :  { %819 = vmatprep.subr.mxu0 %v344_v44 }
  0x7d   :  { %820 = vmatpush3.msra.mxu0 %v344_v44 }
  0x7e   :  { %821 = vmatprep.subr.mxu0 %v343_v45 }
  0x7f   :  { %822 = vmatpush3.msra.mxu0 %v343_v45  ;;  %v640_v45 = vld [vmem:[%s1192_s9] ss:$0 sm:$0xff] }
  0x80   :  { %823 = vmatprep.subr.mxu0 %v342_v46 }
  0x81   :  { %824 = vmatpush3.msra.mxu0 %v342_v46 }
  0x82   :  { %825 = vmatprep.subr.mxu0 %v341_v47 }
  0x83   :  { %826 = vmatpush3.msra.mxu0 %v341_v47 }
  0x84   :  { %827 = vmatprep.subr.mxu0 %v340_v2 }
  0x85   :  { %828 = vmatpush3.msra.mxu0 %v340_v2 }
  0x86   :  { %829 = vmatprep.subr.mxu0 %v339_v4 }
  0x87   :  { %830 = vmatpush3.msra.mxu0 %v339_v4 }
  0x88   :  { %831 = vmatprep.subr.mxu0 %v338_v6 }
  0x89   :  { %832 = vmatpush3.msra.mxu0 %v338_v6 }
  0x8a   :  { %834 = vmatmul.mubr.f32.vlgmr.msra.gmra.mxu0 %v121_v9  ;;  %871 = vmatprep.subr.mxu0 %v530_v11 }
  0x8b   :  { %872 = vmatpush3.msra.mxu0 %v530_v11 }
  0x8c   :  { %873 = vmatprep.subr.mxu0 %v529_v12 }
  0x8d   :  { %874 = vmatpush3.msra.mxu0 %v529_v12 }
  0x8e   :  { %875 = vmatprep.subr.mxu0 %v528_v13 }
  0x8f   :  { %876 = vmatpush3.msra.mxu0 %v528_v13 }
  0x90   :  { %877 = vmatprep.subr.mxu0 %v527_v14 }
  0x91   :  { %878 = vmatpush3.msra.mxu0 %v527_v14 }
  0x92   :  { %879 = vmatprep.subr.mxu0 %v526_v15 }
  0x93   :  { %880 = vmatpush3.msra.mxu0 %v526_v15 }
  0x94   :  { %881 = vmatprep.subr.mxu0 %v525_v16 }
  0x95   :  { %882 = vmatpush3.msra.mxu0 %v525_v16 }
  0x96   :  { %883 = vmatprep.subr.mxu0 %v524_v17 }
  0x97   :  { %884 = vmatpush3.msra.mxu0 %v524_v17 }
  0x98   :  { %885 = vmatprep.subr.mxu0 %v523_v18 }
  0x99   :  { %886 = vmatpush3.msra.mxu0 %v523_v18 }
  0x9a   :  { %887 = vmatprep.subr.mxu0 %v522_v19 }
  0x9b   :  { %888 = vmatpush3.msra.mxu0 %v522_v19 }
  0x9c   :  { %889 = vmatprep.subr.mxu0 %v521_v20 }
  0x9d   :  { %890 = vmatpush3.msra.mxu0 %v521_v20 }
  0x9e   :  { %891 = vmatprep.subr.mxu0 %v520_v21 }
  0x9f   :  { %892 = vmatpush3.msra.mxu0 %v520_v21 }
  0xa0   :  { %893 = vmatprep.subr.mxu0 %v519_v29 }
  0xa1   :  { %894 = vmatpush3.msra.mxu0 %v519_v29 }
  0xa2   :  { %895 = vmatprep.subr.mxu0 %v518_v30 }
  0xa3   :  { %896 = vmatpush3.msra.mxu0 %v518_v30 }
  0xa4   :  { %897 = vmatprep.subr.mxu0 %v517_v31 }
  0xa5   :  { %898 = vmatpush3.msra.mxu0 %v517_v31 }
  0xa6   :  { %899 = vmatprep.subr.mxu0 %v516_v32 }
  0xa7   :  { %900 = vmatpush3.msra.mxu0 %v516_v32 }
  0xa8   :  { %901 = vmatprep.subr.mxu0 %v515_v33 }
  0xa9   :  { %902 = vmatpush3.msra.mxu0 %v515_v33 }
 0x129   :  { %v765_v49 = vpop.f32.mrf.mxu0 }
 0x12a   :  { %v217_v50 = vadd.f32 %v765_v49, %v637_v48 }
 0x12b   :  { %v211_v51 = vpop.f32.mrf.mxu0 }
 0x12c   :  { %v212_v52 = vadd.f32 %v637_v48, %v211_v51  ;;  %v221_v54 = vmax.f32 %v217_v50, 0.0 }
 0x12e   :  { %v220_v53 = vmax.f32 %v212_v52, 0.0 }
 0x130   :  { %798 = vmatprep.mubr.f32.mxu1 %v220_v53 }
 0x131   :  { %799 = vmatmul.mubr.f32.vlgmr.msra.gmra.mxu1 %v221_v54 }
 0x132   :  { %837 = vmatpush3.msra.mxu1 %v337_v36 }
 0x133   :  { %838 = vmatprep.subr.mxu1 %v336_v55 }
 0x134   :  { %839 = vmatpush3.msra.mxu1 %v336_v55 }
 0x135   :  { %840 = vmatprep.subr.mxu1 %v335_v56 }
 0x136   :  { %841 = vmatpush3.msra.mxu1 %v335_v56 }
 0x137   :  { %842 = vmatprep.subr.mxu1 %v334_v57 }
 0x138   :  { %843 = vmatpush3.msra.mxu1 %v334_v57 }
 0x139   :  { %844 = vmatprep.subr.mxu1 %v333_v58 }
 0x13a   :  { %845 = vmatpush3.msra.mxu1 %v333_v58 }
 0x13b   :  { %846 = vmatprep.subr.mxu1 %v332_v59 }
 0x13c   :  { %847 = vmatpush3.msra.mxu1 %v332_v59 }
 0x13d   :  { %848 = vmatprep.subr.mxu1 %v331_v60 }
 0x13e   :  { %849 = vmatpush3.msra.mxu1 %v331_v60 }
 0x13f   :  { %850 = vmatprep.subr.mxu1 %v330_v61 }
 0x140   :  { %851 = vmatpush3.msra.mxu1 %v330_v61 }
 0x141   :  { %852 = vmatprep.subr.mxu1 %v329_v62 }
 0x142   :  { %853 = vmatpush3.msra.mxu1 %v329_v62 }
 0x143   :  { %854 = vmatprep.subr.mxu1 %v328_v63 }
 0x144   :  { %855 = vmatpush3.msra.mxu1 %v328_v63 }
 0x145   :  { %856 = vmatprep.subr.mxu1 %v327_v0 }
 0x146   :  { %857 = vmatpush3.msra.mxu1 %v327_v0 }
 0x147   :  { %858 = vmatprep.subr.mxu1 %v326_v1 }
 0x148   :  { %859 = vmatpush3.msra.mxu1 %v326_v1 }
 0x149   :  { %860 = vmatprep.subr.mxu1 %v325_v3 }
 0x14a   :  { %861 = vmatpush3.msra.mxu1 %v325_v3  ;;  %v835_v34 = vpop.f32.mrf.mxu0 }
 0x14b   :  { %862 = vmatprep.subr.mxu1 %v324_v5 }
 0x14c   :  { %863 = vmatpush3.msra.mxu1 %v324_v5  ;;  %v420_v38 = vpop.f32.mrf.mxu0 }
 0x14d   :  { %864 = vmatprep.subr.mxu1 %v323_v7 }
 0x14e   :  { %865 = vmatpush3.msra.mxu1 %v323_v7 }
 0x14f   :  { %866 = vmatprep.subr.mxu1 %v322_v10 }
 0x150   :  { %867 = vmatpush3.msra.mxu1 %v322_v10 }
 0x1f1   :  { %v800_v23 = vpop.f32.mrf.mxu1 }
 0x1f2   :  { %v317_v24 = vadd.f32 %v800_v23, %v638_v22 }
 0x1f3   :  { %v311_v25 = vpop.f32.mrf.mxu1 }
 0x1f4   :  { %v312_v26 = vadd.f32 %v638_v22, %v311_v25  ;;  %v321_v28 = vmax.f32 %v317_v24, 0.0 }
 0x1f6   :  { %v320_v27 = vmax.f32 %v312_v26, 0.0 }
 0x1f8   :  { %868 = vmatprep.mubr.f32.mxu1 %v320_v27 }
 0x1f9   :  { %869 = vmatmul.mubr.f32.vlgmr.msra.gmra.mxu1 %v321_v28 }
 0x2b9   :  { %v870_v35 = vpop.f32.mrf.mxu1 }
 0x2ba   :  { %v501_v36 = vadd.f32 %v870_v35, %v835_v34 }
 0x2bb   :  { %v495_v39 = vpop.f32.mrf.mxu1 }
 0x2bc   :  { %v496_v40 = vadd.f32 %v495_v39, %v420_v38  ;;  %v512_v41 = vadd.f32 %v639_v37, %v501_v36 }
 0x2be   :  { %v511_v42 = vadd.f32 %v639_v37, %v496_v40  ;;  %v514_v44 = vmax.f32 %v512_v41, 0.0 }
 0x2c0   :  { %v513_v43 = vmax.f32 %v511_v42, 0.0 }
 0x2c2   :  { %903 = vmatprep.mubr.f32.mxu0 %v513_v43 }
 0x2c3   :  { %904 = vmatmul.mubr.f32.vlgmr.msra.gmra.mxu0 %v514_v44 }
 0x383   :  { %v905_v46 = vpop.f32.mrf.mxu0 }
 0x384   :  { %v610_v47 = vadd.f32 %v905_v46, %v640_v45 }
 0x385   :  { %v604_v48 = vpop.f32.mrf.mxu0 }
 0x386   :  { %v614_v49 = vmax.f32 %v610_v47, 0.0  ;;  %v605_v50 = vadd.f32 %v640_v45, %v604_v48 }
 0x388   :  { %616 = vst [vmem:[#allocation13 + $0x8] sm:$0xff] %v614_v49  ;;  %v613_v51 = vmax.f32 %v605_v50, 0.0 }
 0x38a   :  { %615 = vst [vmem:[#allocation13] sm:$0xff] %v613_v51 }
 0x38b   :  { %1046 = shalt.err (!%p1043_p6)
}
 0x38c   :  { %628 = dma.vmem_to_hbm [thread:$0]  %s623_s28, 256, %s1193_s10, [#allocation4], %s1067_s18, %s1067_s18, %s1068_s19  }
 0x38d   :  { %1063 = dma.done.wait [#allocation4], 256  }
 0x38e   :  { %1064 = vsyncadd [#allocation4], 4294967040 }
 0x38f   :  { %632 = vsyncpa [#allocation3], 1 }
 0x390   :  { %633 = vsyncpa [#allocation6], 1 }
 0x391   :  { %634 = vsyncpa [#allocation9], 1 }
 0x392   :  { %635 = vsyncpa [#allocation12], 1 }
 0x393   :  { %636 = vsyncpa [#allocation4], 1 }

</bundles_post_ra>
